<compile_context>
chip_gen: v7x
topology: tpu7x:2x2x1
jax: 0.10.0
libtpu: 0.0.40
codegen_flags: <defaults>
</compile_context>

<pallas_src>
import jax
import jax.numpy as jnp
from jax.experimental import pallas as pl
from jax.experimental.pallas import tpu as pltpu

NUM_ENSEMBLE = 3
LEAKY_SLOPE = 0.01


def _round_up(x, m):
    return ((x + m - 1) // m) * m


def _reward_kernel(x_ref, a_in_ref, b_in_ref, a_h_ref, b_h_ref,
                   w_out_ref, b_out_ref, o_ref):
    """Fused 3-member ensemble forward for one batch tile.

    Shapes (f32, batch-on-lanes layout):
      x_ref     [D, TB]      activations (batch on the lane axis)
      a_in_ref  [3H, D]      fused (transposed) input-layer weights
      b_in_ref  [3H, 1]
      a_h_ref   [L, 3H, 3H]  fused block-diagonal hidden weights (transposed)
      b_h_ref   [L, 3H, 1]
      w_out_ref [3H, 1]      fused output weights, pre-scaled by 1/NUM_ENSEMBLE
      b_out_ref [1, 1]       mean of the 3 output biases
      o_ref     [1, TB]      mean ensemble reward (lane-dense)
    """
    h = jnp.dot(a_in_ref[...], x_ref[...],
                preferred_element_type=jnp.float32) + b_in_ref[...]
    num_layers = a_h_ref.shape[0]
    for l in range(num_layers):
        h = jnp.dot(a_h_ref[l], h,
                    preferred_element_type=jnp.float32) + b_h_ref[l]
        h = jnp.maximum(h, LEAKY_SLOPE * h)            # LeakyReLU(0.01)
    # Dropout(p=0.1) -> identity at inference.  # TODO(synk): eval semantics only
    # Output projection + ensemble mean: sublane reduce on the XLU instead of
    # an N=1 MXU matmul; the 1/3 scale is already folded into w_out / b_out.
    r = jnp.sum(h * w_out_ref[...], axis=0, keepdims=True)     # [1, TB]
    o_ref[...] = r + b_out_ref[...]


def fuse_ensemble_params(params):
    """One-time prep: fuse the 3 ensemble members (+ mean) into wide weights."""
    w_in, b_in, w_h, b_h, w_out, b_out = params
    e_dim, in_dim, hid = w_in.shape
    n_layers = w_h.shape[1]

    # Input layer -> [3H, D] (transposed for batch-on-lanes matmuls).
    a_in = jnp.concatenate([w_in[e].T for e in range(e_dim)], axis=0)
    b_in_col = jnp.concatenate([b_in[e] for e in range(e_dim)], axis=0)[:, None]

    # Hidden layers -> block-diagonal [L, 3H, 3H] (transposed blocks).
    zero = jnp.zeros((hid, hid), w_h.dtype)
    a_h_layers = []
    for l in range(n_layers):
        rows = []
        for e in range(e_dim):
            blocks = [w_h[e, l].T if j == e else zero for j in range(e_dim)]
            rows.append(jnp.concatenate(blocks, axis=1))
        a_h_layers.append(jnp.concatenate(rows, axis=0))
    a_h = jnp.stack(a_h_layers, axis=0)
    b_h_col = jnp.stack(
        [jnp.concatenate([b_h[e, l] for e in range(e_dim)], axis=0)
         for l in range(n_layers)], axis=0)[:, :, None]

    # Output layer with the ensemble mean folded in.
    w_out_col = jnp.concatenate([w_out[e] for e in range(e_dim)], axis=0) / e_dim
    b_out_s = (jnp.sum(b_out) / e_dim).reshape(1, 1)

    return (a_in, b_in_col, a_h, b_h_col, w_out_col, b_out_s)


def reward_net_forward(obs, act, fused_params, *, block_b=512):
    """obs: [B, obs_dim], act: [B, act_dim] -> mean ensemble reward [B, 1]."""
    a_in, b_in, a_h, b_h, w_out, b_out = fused_params
    B = obs.shape[0]
    D = obs.shape[1] + act.shape[1]
    H3 = a_in.shape[0]
    L = a_h.shape[0]

    # Batch tile (lane axis): multiple of 128, capped at block_b.
    tb = min(block_b, _round_up(B, 128))
    b_pad = _round_up(B, tb)

    # Single wrapper-side copy: concat + transpose + pad to batch-on-lanes.
    x_t = jnp.concatenate([obs, act], axis=1).astype(jnp.float32).T   # [D, B]
    x_t = jnp.pad(x_t, ((0, 0), (0, b_pad - B)))

    grid = (b_pad // tb,)
    flops = 2 * b_pad * (D * H3 + L * H3 * H3 + H3)
    bytes_accessed = 4 * (D * b_pad + b_pad + a_in.size + a_h.size
                          + H3 * (L + 2) + 1)

    out = pl.pallas_call(
        _reward_kernel,
        out_shape=jax.ShapeDtypeStruct((1, b_pad), jnp.float32),
        grid=grid,
        in_specs=[
            pl.BlockSpec((D, tb), lambda i: (0, i)),          # activations
            pl.BlockSpec((H3, D), lambda i: (0, 0)),          # resident weights
            pl.BlockSpec((H3, 1), lambda i: (0, 0)),
            pl.BlockSpec((L, H3, H3), lambda i: (0, 0, 0)),
            pl.BlockSpec((L, H3, 1), lambda i: (0, 0, 0)),
            pl.BlockSpec((H3, 1), lambda i: (0, 0)),
            pl.BlockSpec((1, 1), lambda i: (0, 0)),
        ],
        out_specs=pl.BlockSpec((1, tb), lambda i: (0, i)),    # lane-dense output
        compiler_params=pltpu.CompilerParams(
            dimension_semantics=("parallel",)),
        cost_estimate=pl.CostEstimate(
            flops=flops, transcendentals=0, bytes_accessed=bytes_accessed),
    )(x_t, a_in, b_in, a_h, b_h, w_out, b_out)

    return out[0, :B].reshape(B, 1)


def init_params(key, in_dim, hidden_dim, hidden_layers):
    """Deterministic PyTorch-Linear-style init: U(-1/sqrt(fan_in), 1/sqrt(fan_in))."""
    ks = jax.random.split(key, 6)

    def u(k, shape, fan_in):
        bound = 1.0 / jnp.sqrt(jnp.float32(fan_in))
        return jax.random.uniform(k, shape, jnp.float32, -bound, bound)

    w_in = u(ks[0], (NUM_ENSEMBLE, in_dim, hidden_dim), in_dim)
    b_in = u(ks[1], (NUM_ENSEMBLE, hidden_dim), in_dim)
    w_h = u(ks[2], (NUM_ENSEMBLE, hidden_layers, hidden_dim, hidden_dim), hidden_dim)
    b_h = u(ks[3], (NUM_ENSEMBLE, hidden_layers, hidden_dim), hidden_dim)
    w_out = u(ks[4], (NUM_ENSEMBLE, hidden_dim, 1), hidden_dim)
    b_out = u(ks[5], (NUM_ENSEMBLE, 1), hidden_dim)
    return (w_in, b_in, w_h, b_h, w_out, b_out)


def _reference_forward(obs, act, params):
    """Pure-JAX reference of the PyTorch forward (unfused, per member)."""
    w_in, b_in, w_h, b_h, w_out, b_out = params
    x = jnp.concatenate([obs, act], axis=1)
    outs = []
    for e in range(NUM_ENSEMBLE):
        h = x @ w_in[e] + b_in[e]
        for l in range(w_h.shape[1]):
            h = h @ w_h[e, l] + b_h[e, l]
            h = jnp.where(h > 0, h, LEAKY_SLOPE * h)
        outs.append(h @ w_out[e] + b_out[e])
    return jnp.mean(jnp.stack(outs, axis=0), axis=0)


if __name__ == "__main__":
    # Small shapes: batch=8, obs_dim=16, act_dim=8, hidden=32, hidden_layers=2
    B, OBS_DIM, ACT_DIM = 8, 16, 8
    HIDDEN, LAYERS = 32, 2
    IN_DIM = OBS_DIM + ACT_DIM

    key = jax.random.PRNGKey(0)
    k_obs, k_act, k_params = jax.random.split(key, 3)
    obs = jax.random.normal(k_obs, (B, OBS_DIM), jnp.float32)
    act = jax.random.normal(k_act, (B, ACT_DIM), jnp.float32)
    params = init_params(k_params, IN_DIM, HIDDEN, LAYERS)
    fused = fuse_ensemble_params(params)   # one-time weight prep, not per call

    out = reward_net_forward(obs, act, fused)
    out = jax.block_until_ready(out)
    ref = _reference_forward(obs, act, params)
    assert out.shape == (B, 1)
    assert jnp.allclose(out, ref, atol=1e-4, rtol=1e-4), \
        float(jnp.max(jnp.abs(out - ref)))

    # Extra check: ragged batch with a multi-step grid (padding + parallel axis).
    B2 = 300
    k_o2, k_a2 = jax.random.split(jax.random.PRNGKey(1), 2)
    obs2 = jax.random.normal(k_o2, (B2, OBS_DIM), jnp.float32)
    act2 = jax.random.normal(k_a2, (B2, ACT_DIM), jnp.float32)
    out2 = jax.block_until_ready(
        reward_net_forward(obs2, act2, fused, block_b=128))
    ref2 = _reference_forward(obs2, act2, params)
    assert out2.shape == (B2, 1)
    assert jnp.allclose(out2, ref2, atol=1e-4, rtol=1e-4)

    print("KERNEL_OK")
</pallas_src>

<mosaic_0001>
module attributes {stable_mosaic.version = 11 : i64} {
  func.func @_reward_kernel(%arg0: i32, %arg1: memref<24x128xf32, #tpu.memory_space<vmem>>, %arg2: memref<96x24xf32, #tpu.memory_space<vmem>>, %arg3: memref<96x1xf32, #tpu.memory_space<vmem>>, %arg4: memref<2x96x96xf32, #tpu.memory_space<vmem>>, %arg5: memref<2x96x1xf32, #tpu.memory_space<vmem>>, %arg6: memref<96x1xf32, #tpu.memory_space<vmem>>, %arg7: memref<1x1xf32, #tpu.memory_space<vmem>>, %arg8: memref<1x128xf32, #tpu.memory_space<vmem>>) attributes {dimension_semantics = [#tpu.dimension_semantics<parallel>], iteration_bounds = array<i64: 1>, scalar_prefetch = 0 : i64, scratch_operands = 0 : i64, tpu.core_type = #tpu.core_type<tc>, window_params = [{transform_indices = @transform_0, window_bounds = array<i64: 24, 128>}, {pipeline_mode = #tpu.pipeline_mode<synchronous>, transform_indices = @transform_1, window_bounds = array<i64: 96, 24>}, {pipeline_mode = #tpu.pipeline_mode<synchronous>, transform_indices = @transform_2, window_bounds = array<i64: 96, 1>}, {pipeline_mode = #tpu.pipeline_mode<synchronous>, transform_indices = @transform_3, window_bounds = array<i64: 2, 96, 96>}, {pipeline_mode = #tpu.pipeline_mode<synchronous>, transform_indices = @transform_4, window_bounds = array<i64: 2, 96, 1>}, {pipeline_mode = #tpu.pipeline_mode<synchronous>, transform_indices = @transform_5, window_bounds = array<i64: 96, 1>}, {pipeline_mode = #tpu.pipeline_mode<synchronous>, transform_indices = @transform_6, window_bounds = array<i64: 1, 1>}, {transform_indices = @transform_7, window_bounds = array<i64: 1, 128>}]} {
    %c0 = arith.constant 0 : index
    %c0_0 = arith.constant 0 : index
    %0 = vector.load %arg2[%c0, %c0_0] : memref<96x24xf32, #tpu.memory_space<vmem>>, vector<96x24xf32>
    %c0_1 = arith.constant 0 : index
    %c0_2 = arith.constant 0 : index
    %1 = vector.load %arg1[%c0_1, %c0_2] : memref<24x128xf32, #tpu.memory_space<vmem>>, vector<24x128xf32>
    %cst = arith.constant dense<0.000000e+00> : vector<96x128xf32>
    %2 = tpu.matmul %0, %1, %cst {dimension_numbers = #tpu.dot_dimension_numbers<[1], [0], [0], [1], [0, 0, 1, 1], [], []>} : vector<96x24xf32>, vector<24x128xf32>, vector<96x128xf32> -> vector<96x128xf32>
    %c0_3 = arith.constant 0 : index
    %c0_4 = arith.constant 0 : index
    %3 = vector.load %arg3[%c0_3, %c0_4] : memref<96x1xf32, #tpu.memory_space<vmem>>, vector<96x1xf32>
    %4 = vector.broadcast %3 : vector<96x1xf32> to vector<96x128xf32>
    %5 = arith.addf %2, %4 : vector<96x128xf32>
    %c0_5 = arith.constant 0 : index
    %c0_6 = arith.constant 0 : index
    %c0_7 = arith.constant 0 : index
    %6 = vector.load %arg4[%c0_5, %c0_6, %c0_7] : memref<2x96x96xf32, #tpu.memory_space<vmem>>, vector<1x96x96xf32>
    %7 = vector.shape_cast %6 : vector<1x96x96xf32> to vector<96x96xf32>
    %cst_8 = arith.constant dense<0.000000e+00> : vector<96x128xf32>
    %8 = tpu.matmul %7, %5, %cst_8 {dimension_numbers = #tpu.dot_dimension_numbers<[1], [0], [0], [1], [0, 0, 1, 1], [], []>} : vector<96x96xf32>, vector<96x128xf32>, vector<96x128xf32> -> vector<96x128xf32>
    %c0_9 = arith.constant 0 : index
    %c0_10 = arith.constant 0 : index
    %c0_11 = arith.constant 0 : index
    %9 = vector.load %arg5[%c0_9, %c0_10, %c0_11] : memref<2x96x1xf32, #tpu.memory_space<vmem>>, vector<1x96x1xf32>
    %10 = vector.shape_cast %9 : vector<1x96x1xf32> to vector<96x1xf32>
    %11 = vector.broadcast %10 : vector<96x1xf32> to vector<96x128xf32>
    %12 = arith.addf %8, %11 : vector<96x128xf32>
    %cst_12 = arith.constant 0.00999999977 : f32
    %13 = vector.broadcast %cst_12 : f32 to vector<96x128xf32>
    %14 = arith.mulf %13, %12 : vector<96x128xf32>
    %15 = arith.maximumf %12, %14 : vector<96x128xf32>
    %c1 = arith.constant 1 : index
    %c0_13 = arith.constant 0 : index
    %c0_14 = arith.constant 0 : index
    %16 = vector.load %arg4[%c1, %c0_13, %c0_14] : memref<2x96x96xf32, #tpu.memory_space<vmem>>, vector<1x96x96xf32>
    %17 = vector.shape_cast %16 : vector<1x96x96xf32> to vector<96x96xf32>
    %cst_15 = arith.constant dense<0.000000e+00> : vector<96x128xf32>
    %18 = tpu.matmul %17, %15, %cst_15 {dimension_numbers = #tpu.dot_dimension_numbers<[1], [0], [0], [1], [0, 0, 1, 1], [], []>} : vector<96x96xf32>, vector<96x128xf32>, vector<96x128xf32> -> vector<96x128xf32>
    %c1_16 = arith.constant 1 : index
    %c0_17 = arith.constant 0 : index
    %c0_18 = arith.constant 0 : index
    %19 = vector.load %arg5[%c1_16, %c0_17, %c0_18] : memref<2x96x1xf32, #tpu.memory_space<vmem>>, vector<1x96x1xf32>
    %20 = vector.shape_cast %19 : vector<1x96x1xf32> to vector<96x1xf32>
    %21 = vector.broadcast %20 : vector<96x1xf32> to vector<96x128xf32>
    %22 = arith.addf %18, %21 : vector<96x128xf32>
    %cst_19 = arith.constant 0.00999999977 : f32
    %23 = vector.broadcast %cst_19 : f32 to vector<96x128xf32>
    %24 = arith.mulf %23, %22 : vector<96x128xf32>
    %25 = arith.maximumf %22, %24 : vector<96x128xf32>
    %c0_20 = arith.constant 0 : index
    %c0_21 = arith.constant 0 : index
    %26 = vector.load %arg6[%c0_20, %c0_21] : memref<96x1xf32, #tpu.memory_space<vmem>>, vector<96x1xf32>
    %27 = vector.broadcast %26 : vector<96x1xf32> to vector<96x128xf32>
    %28 = arith.mulf %25, %27 : vector<96x128xf32>
    %cst_22 = arith.constant dense<0.000000e+00> : vector<128xf32>
    %29 = vector.multi_reduction <add>, %28, %cst_22 [0] : vector<96x128xf32> to vector<128xf32>
    %30 = vector.shape_cast %29 : vector<128xf32> to vector<1x128xf32>
    %c0_23 = arith.constant 0 : index
    %c0_24 = arith.constant 0 : index
    %31 = vector.load %arg7[%c0_23, %c0_24] : memref<1x1xf32, #tpu.memory_space<vmem>>, vector<1x1xf32>
    %32 = vector.broadcast %31 : vector<1x1xf32> to vector<1x128xf32>
    %33 = arith.addf %30, %32 : vector<1x128xf32>
    %c0_25 = arith.constant 0 : index
    %c0_26 = arith.constant 0 : index
    %34 = vector.load %arg8[%c0_25, %c0_26] : memref<1x128xf32, #tpu.memory_space<vmem>>, vector<1x128xf32>
    tpu.vector_store %arg8[%c0_25, %c0_26], %33 {strides = array<i32>} : memref<1x128xf32, #tpu.memory_space<vmem>>, vector<1x128xf32>,
    return
  }
  func.func @transform_0(%arg0: i32) -> (i32, i32) {
    %c0_i32 = arith.constant 0 : i32
    %c0_i32_0 = arith.constant 0 : i32
    return %c0_i32, %arg0 : i32, i32
  }
  func.func @transform_1(%arg0: i32) -> (i32, i32) {
    %c0_i32 = arith.constant 0 : i32
    %c0_i32_0 = arith.constant 0 : i32
    %c0_i32_1 = arith.constant 0 : i32
    return %c0_i32, %c0_i32_0 : i32, i32
  }
  func.func @transform_2(%arg0: i32) -> (i32, i32) {
    %c0_i32 = arith.constant 0 : i32
    %c0_i32_0 = arith.constant 0 : i32
    %c0_i32_1 = arith.constant 0 : i32
    return %c0_i32, %c0_i32_0 : i32, i32
  }
  func.func @transform_3(%arg0: i32) -> (i32, i32, i32) {
    %c0_i32 = arith.constant 0 : i32
    %c0_i32_0 = arith.constant 0 : i32
    %c0_i32_1 = arith.constant 0 : i32
    %c0_i32_2 = arith.constant 0 : i32
    return %c0_i32, %c0_i32_0, %c0_i32_1 : i32, i32, i32
  }
  func.func @transform_4(%arg0: i32) -> (i32, i32, i32) {
    %c0_i32 = arith.constant 0 : i32
    %c0_i32_0 = arith.constant 0 : i32
    %c0_i32_1 = arith.constant 0 : i32
    %c0_i32_2 = arith.constant 0 : i32
    return %c0_i32, %c0_i32_0, %c0_i32_1 : i32, i32, i32
  }
  func.func @transform_5(%arg0: i32) -> (i32, i32) {
    %c0_i32 = arith.constant 0 : i32
    %c0_i32_0 = arith.constant 0 : i32
    %c0_i32_1 = arith.constant 0 : i32
    return %c0_i32, %c0_i32_0 : i32, i32
  }
  func.func @transform_6(%arg0: i32) -> (i32, i32) {
    %c0_i32 = arith.constant 0 : i32
    %c0_i32_0 = arith.constant 0 : i32
    %c0_i32_1 = arith.constant 0 : i32
    return %c0_i32, %c0_i32_0 : i32, i32
  }
  func.func @transform_7(%arg0: i32) -> (i32, i32) {
    %c0_i32 = arith.constant 0 : i32
    %c0_i32_0 = arith.constant 0 : i32
    return %c0_i32, %arg0 : i32, i32
  }
}

</mosaic_0001>

<bundles_post_ra>
// kernel: tpu_custom_call.1
= control target key start
LH: loop header
LB: loop body
LE: loop exit
PB: predicated region body
PF: predicated region fallthrough
CT: control target
= control target key end

     0   :  { %s1611_s0 = inlined_call_operand.vmem [shape: f32[24,128], index: 0, kind: input, shape index: {}]   ;;  %s1612_s1 = inlined_call_operand.vmem [shape: f32[96,24], index: 1, kind: input, shape index: {}]   ;;  %s1613_s2 = inlined_call_operand.vmem [shape: f32[96,1], index: 2, kind: input, shape index: {}]   ;;  %s1614_s3 = inlined_call_operand.vmem [shape: f32[2,96,96], index: 3, kind: input, shape index: {}]   ;;  %s1615_s4 = inlined_call_operand.vmem [shape: f32[2,96,1], index: 4, kind: input, shape index: {}]   ;;  %s1616_s5 = inlined_call_operand.vmem [shape: f32[96,1], index: 5, kind: input, shape index: {}]   ;;  %s1617_s6 = inlined_call_operand.<no memory space> [shape: f32[1,1], index: 6, kind: input, shape index: {}]   ;;  %s1618_s7 = inlined_call_operand.hbm [shape: f32[1,128], index: 7, kind: output, shape index: {}]  }
   0x1   :  { %v12_v0 = vstv %s1617_s6 }
   0x2   :  { %13 = vst [vmem:[#allocation2] sm:$0x1] %v12_v0 }
   0x3   :  { %v46_v1 = vld [vmem:[%s1613_s2 + $0x10] sm:$0xff]  ;;  %v44_v2 = vld [vmem:[%s1613_s2] sm:$0xff]  ;;  %vm116_vm0 = vcmask 195584   ;;  %v1257_v4 = vmov 0   ;;  %v42_v5 = vld [vmem:[%s1611_s0 + $0x8] sm:$0xff] }
   0x4   :  { %v41_v3 = vld [vmem:[%s1611_s0] sm:$0xff]  ;;  %1232 = vset.pattern.permute.xlu1 %v1257_v4  ;;  %1231 = vset.pattern.permute.xlu0 %v1257_v4  ;;  %v47_v8 = vld [vmem:[%s1613_s2 + $0x18] sm:$0xff]  ;;  %v45_v9 = vld [vmem:[%s1613_s2 + $0x8] sm:$0xff] }
   0x5   :  { %68 = vperm.xlu1 %1232, %v46_v1   ;;  %58 = vperm.xlu0 %1231, %v44_v2   ;;  %v1177_v6 = vpack.c.bf16 %v42_v5, %v41_v3  ;;  %v29_v7 = vld [vmem:[%s1612_s1] sm:$0xff]  ;;  %v43_v10 = vld [vmem:[%s1611_s0 + $0x10] sm:$0xff]  ;;  %v30_v11 = vld [vmem:[%s1612_s1 + $0x8] sm:$0xff] }
   0x6   :  { %1075 = vmatprep.mubr.msk.f32.mxu0 %vm116_vm0, %v29_v7  ;;  %v49_v12 = vld [vmem:[%s1613_s2 + $0x28] sm:$0xff]  ;;  %v48_v13 = vld [vmem:[%s1613_s2 + $0x20] sm:$0xff]  ;;  %v31_v14 = vld [vmem:[%s1612_s1 + $0x10] sm:$0xff] }
   0x7   :  { %1178 = vmatprep.subr.bf16.mxu0 %v1177_v6  ;;  %v32_v15 = vld [vmem:[%s1612_s1 + $0x18] sm:$0xff]  ;;  %v50_v17 = vld [vmem:[%s1613_s2 + $0x30] sm:$0xff]  ;;  %v33_v18 = vld [vmem:[%s1612_s1 + $0x20] sm:$0xff] }
   0x8   :  { %1180 = vmatpush3.bf16.msra.mxu0 %v1177_v6  ;;  %v51_v16 = vld [vmem:[%s1613_s2 + $0x38] sm:$0xff]  ;;  %v34_v19 = vld [vmem:[%s1612_s1 + $0x28] sm:$0xff]  ;;  %v52_v21 = vld [vmem:[%s1613_s2 + $0x40] sm:$0xff] }
   0x9   :  { %73 = vperm.xlu1 %1232, %v47_v8   ;;  %63 = vperm.xlu0 %1231, %v45_v9   ;;  %v53_v20 = vld [vmem:[%s1613_s2 + $0x48] sm:$0xff]  ;;  %v35_v22 = vld [vmem:[%s1612_s1 + $0x30] sm:$0xff]  ;;  %v36_v23 = vld [vmem:[%s1612_s1 + $0x38] sm:$0xff] }
   0xa   :  { %1073 = vmatprep.subr.mxu0 %v43_v10  ;;  %v55_v24 = vld [vmem:[%s1613_s2 + $0x58] sm:$0xff]  ;;  %v54_v25 = vld [vmem:[%s1613_s2 + $0x50] sm:$0xff]  ;;  %v37_v26 = vld [vmem:[%s1612_s1 + $0x40] sm:$0xff] }
   0xc   :  { %1074 = vmatpush3.msra.mxu0 %v43_v10 }
   0xd   :  { %1076 = vmatmul.mubr.msk.f32.vlgmr.msra.gmra.mrb[0].mxu0 %vm116_vm0, %v30_v11  ;;  %83 = vperm.xlu1 %1232, %v49_v12  }
   0xe   :  { %78 = vperm.xlu0 %1231, %v48_v13   ;;  %1078 = vmatprep.mubr.msk.f32.mxu0 %vm116_vm0, %v31_v14 }
  0x11   :  { %1079 = vmatmul.mubr.msk.f32.gmra.mrb[2].mxu0 %vm116_vm0, %v32_v15  ;;  %93 = vperm.xlu1 %1232, %v51_v16  }
  0x12   :  { %88 = vperm.xlu0 %1231, %v50_v17   ;;  %1081 = vmatprep.mubr.msk.f32.mxu0 %vm116_vm0, %v33_v18 }
  0x15   :  { %1082 = vmatmul.mubr.msk.f32.gmra.mrb[4].mxu0 %vm116_vm0, %v34_v19  ;;  %103 = vperm.xlu1 %1232, %v53_v20  }
  0x16   :  { %98 = vperm.xlu0 %1231, %v52_v21   ;;  %1084 = vmatprep.mubr.msk.f32.mxu0 %vm116_vm0, %v35_v22 }
  0x17   :  { %14 = vsyncpa [#allocation4], 0  ;;  %v38_v27 = vld [vmem:[%s1612_s1 + $0x48] sm:$0xff]  ;;  %v290_v29 = vld [vmem:[%s1615_s4] sm:$0xff]  ;;  %vm362_vm1 = vcmask 785408  }
  0x18   :  { %v291_v28 = vld [vmem:[%s1615_s4 + $0x8] sm:$0xff]  ;;  %v39_v30 = vld [vmem:[%s1612_s1 + $0x50] sm:$0xff]  ;;  %v40_v31 = vld [vmem:[%s1612_s1 + $0x58] sm:$0xff] }
  0x19   :  { %1085 = vmatmul.mubr.msk.f32.gmra.mrb[6].mxu0 %vm116_vm0, %v36_v23  ;;  %113 = vperm.xlu1 %1232, %v55_v24   ;;  %v293_v32 = vld [vmem:[%s1615_s4 + $0x18] sm:$0xff]  ;;  %v292_v33 = vld [vmem:[%s1615_s4 + $0x10] sm:$0xff]  ;;  %v295_v34 = vld [vmem:[%s1615_s4 + $0x28] sm:$0xff] }
  0x1a   :  { %108 = vperm.xlu0 %1231, %v54_v25   ;;  %1087 = vmatprep.mubr.msk.f32.mxu0 %vm116_vm0, %v37_v26  ;;  %v294_v35 = vld [vmem:[%s1615_s4 + $0x20] sm:$0xff]  ;;  %v297_v36 = vld [vmem:[%s1615_s4 + $0x38] sm:$0xff]  ;;  %v296_v37 = vld [vmem:[%s1615_s4 + $0x30] sm:$0xff] }
  0x1b   :  { %v299_v38 = vld [vmem:[%s1615_s4 + $0x48] sm:$0xff]  ;;  %v298_v39 = vld [vmem:[%s1615_s4 + $0x40] sm:$0xff]  ;;  %v301_v40 = vld [vmem:[%s1615_s4 + $0x58] sm:$0xff] }
  0x1c   :  { %v300_v41 = vld [vmem:[%s1615_s4 + $0x50] sm:$0xff]  ;;  %v983_v42 = vld [vmem:[%s1615_s4 + $0x68] sm:$0xff]  ;;  %v982_v43 = vld [vmem:[%s1615_s4 + $0x60] sm:$0xff] }
  0x1d   :  { %1088 = vmatmul.mubr.msk.f32.gmra.mrb[8].mxu0 %vm116_vm0, %v38_v27  ;;  %309 = vperm.xlu1 %1232, %v291_v28   ;;  %v985_v44 = vld [vmem:[%s1615_s4 + $0x78] sm:$0xff]  ;;  %v984_v45 = vld [vmem:[%s1615_s4 + $0x70] sm:$0xff]  ;;  %v819_v46 = vld [vmem:[%s1616_s5] sm:$0xff] }
  0x1e   :  { %304 = vperm.xlu0 %1231, %v290_v29   ;;  %1090 = vmatprep.mubr.msk.f32.mxu0 %vm116_vm0, %v39_v30  ;;  %v986_v47 = vld [vmem:[%s1615_s4 + $0x80] sm:$0xff]  ;;  %v987_v48 = vld [vmem:[%s1615_s4 + $0x88] sm:$0xff]  ;;  %v988_v50 = vld [vmem:[%s1615_s4 + $0x90] sm:$0xff] }
  0x1f   :  { %v820_v49 = vld [vmem:[%s1616_s5 + $0x8] sm:$0xff]  ;;  %v821_v51 = vld [vmem:[%s1616_s5 + $0x10] sm:$0xff]  ;;  %v989_v52 = vld [vmem:[%s1615_s4 + $0x98] sm:$0xff] }
  0x20   :  { %v822_v53 = vld [vmem:[%s1616_s5 + $0x18] sm:$0xff]  ;;  %v990_v54 = vld [vmem:[%s1615_s4 + $0xa0] sm:$0xff]  ;;  %v991_v56 = vld [vmem:[%s1615_s4 + $0xa8] sm:$0xff] }
  0x21   :  { %1091 = vmatmul.mubr.msk.f32.gmra.mrb[10].mxu0 %vm116_vm0, %v40_v31  ;;  %319 = vperm.xlu1 %1232, %v293_v32   ;;  %v823_v55 = vld [vmem:[%s1616_s5 + $0x20] sm:$0xff]  ;;  %v824_v57 = vld [vmem:[%s1616_s5 + $0x28] sm:$0xff]  ;;  %v992_v58 = vld [vmem:[%s1615_s4 + $0xb0] sm:$0xff] }
  0x22   :  { %314 = vperm.xlu0 %1231, %v292_v33   ;;  %v825_v59 = vld [vmem:[%s1616_s5 + $0x30] sm:$0xff]  ;;  %v993_v60 = vld [vmem:[%s1615_s4 + $0xb8] sm:$0xff]  ;;  %v828_v62 = vld [vmem:[%s1616_s5 + $0x48] sm:$0xff] }
  0x23   :  { %v826_v61 = vld [vmem:[%s1616_s5 + $0x38] sm:$0xff]  ;;  %v827_v63 = vld [vmem:[%s1616_s5 + $0x40] sm:$0xff]  ;;  %v829_v1 = vld [vmem:[%s1616_s5 + $0x50] sm:$0xff] }
  0x24   :  { %v830_v0 = vld [vmem:[%s1616_s5 + $0x58] sm:$0xff]  ;;  %v920_v2 = vld [vmem:[#allocation2] sm:$0x1] }
  0x25   :  { %329 = vperm.xlu1 %1232, %v295_v34   ;;  %v278_v3 = vld [vmem:[%s1614_s3] sm:$0xff] }
  0x26   :  { %324 = vperm.xlu0 %1231, %v294_v35   ;;  %1117 = vmatprep.mubr.msk.f32.mxu1 %vm362_vm1, %v278_v3 }
  0x29   :  { %339 = vperm.xlu1 %1232, %v297_v36  }
  0x2a   :  { %334 = vperm.xlu0 %1231, %v296_v37  }
  0x2d   :  { %349 = vperm.xlu1 %1232, %v299_v38  }
  0x2e   :  { %344 = vperm.xlu0 %1231, %v298_v39  }
  0x31   :  { %359 = vperm.xlu1 %1232, %v301_v40  }
  0x32   :  { %354 = vperm.xlu0 %1231, %v300_v41  }
  0x35   :  { %581 = vperm.xlu1 %1232, %v983_v42  }
  0x36   :  { %576 = vperm.xlu0 %1231, %v982_v43  }
  0x39   :  { %591 = vperm.xlu1 %1232, %v985_v44  }
  0x3a   :  { %586 = vperm.xlu0 %1231, %v984_v45  }
  0x3d   :  { %833 = vperm.xlu1 %1232, %v819_v46   ;;  %v279_v46 = vld [vmem:[%s1614_s3 + $0x8] sm:$0xff] }
  0x3e   :  { %596 = vperm.xlu0 %1231, %v986_v47   ;;  %v280_v47 = vld [vmem:[%s1614_s3 + $0x10] sm:$0xff] }
  0x41   :  { %601 = vperm.xlu1 %1232, %v987_v48   ;;  %v281_v48 = vld [vmem:[%s1614_s3 + $0x18] sm:$0xff] }
  0x42   :  { %838 = vperm.xlu0 %1231, %v820_v49   ;;  %v282_v49 = vld [vmem:[%s1614_s3 + $0x20] sm:$0xff] }
  0x45   :  { %606 = vperm.xlu1 %1232, %v988_v50   ;;  %v283_v50 = vld [vmem:[%s1614_s3 + $0x28] sm:$0xff] }
  0x46   :  { %843 = vperm.xlu0 %1231, %v821_v51   ;;  %v284_v51 = vld [vmem:[%s1614_s3 + $0x30] sm:$0xff] }
  0x49   :  { %611 = vperm.xlu1 %1232, %v989_v52   ;;  %v285_v52 = vld [vmem:[%s1614_s3 + $0x38] sm:$0xff] }
  0x4a   :  { %848 = vperm.xlu0 %1231, %v822_v53   ;;  %v286_v53 = vld [vmem:[%s1614_s3 + $0x40] sm:$0xff] }
  0x4d   :  { %616 = vperm.xlu1 %1232, %v990_v54   ;;  %v287_v54 = vld [vmem:[%s1614_s3 + $0x48] sm:$0xff] }
  0x4e   :  { %853 = vperm.xlu0 %1231, %v823_v55   ;;  %v288_v55 = vld [vmem:[%s1614_s3 + $0x50] sm:$0xff] }
  0x51   :  { %621 = vperm.xlu1 %1232, %v991_v56   ;;  %v289_v56 = vld [vmem:[%s1614_s3 + $0x58] sm:$0xff] }
  0x52   :  { %858 = vperm.xlu0 %1231, %v824_v57   ;;  %v970_v57 = vld [vmem:[%s1614_s3 + $0x60] sm:$0xff] }
  0x53   :  { %1159 = vmatprep.mubr.msk.f32.mxu0 %vm362_vm1, %v970_v57 }
  0x55   :  { %626 = vperm.xlu1 %1232, %v992_v58  }
  0x56   :  { %863 = vperm.xlu0 %1231, %v825_v59  }
  0x59   :  { %631 = vperm.xlu1 %1232, %v993_v60  }
  0x5a   :  { %868 = vperm.xlu0 %1231, %v826_v61  }
  0x5d   :  { %878 = vperm.xlu1 %1232, %v828_v62  }
  0x5e   :  { %873 = vperm.xlu0 %1231, %v827_v63  }
  0x61   :  { %888 = vperm.xlu1 %1232, %v830_v0  }
  0x62   :  { %883 = vperm.xlu0 %1231, %v829_v1  }
  0x66   :  { %923 = vperm.xlu0 %1231, %v920_v2  }
  0x84   :  { %v69_v4 = vpop.permute.xlu1 %68  ;;  %v59_v5 = vpop.permute.xlu0 %58 }
  0x88   :  { %v74_v6 = vpop.permute.xlu1 %73  ;;  %v64_v7 = vpop.permute.xlu0 %63 }
  0x8c   :  { %v84_v11 = vpop.permute.xlu1 %83 }
  0x8d   :  { %v79_v13 = vpop.permute.xlu0 %78 }
  0x90   :  { %v94_v19 = vpop.permute.xlu1 %93 }
  0x91   :  { %v89_v22 = vpop.permute.xlu0 %88 }
  0x94   :  { %v104_v30 = vpop.permute.xlu1 %103 }
  0x95   :  { %v99_v32 = vpop.permute.xlu0 %98 }
  0x98   :  { %v114_v38 = vpop.permute.xlu1 %113 }
  0x99   :  { %v109_v41 = vpop.permute.xlu0 %108 }
  0x9c   :  { %v310_v58 = vpop.permute.xlu1 %309 }
  0x9d   :  { %v305_v59 = vpop.permute.xlu0 %304 }
  0xa0   :  { %v320_v60 = vpop.permute.xlu1 %319 }
  0xa1   :  { %v315_v61 = vpop.permute.xlu0 %314 }
  0xa4   :  { %v330_v1 = vpop.permute.xlu1 %329 }
  0xa5   :  { %v325_v3 = vpop.permute.xlu0 %324 }
  0xe0   :  { %v1077_v8 = vpop.f32.mrb[0].mxu0 }
  0xe1   :  { %v225_v9 = vadd.f32 %v1077_v8, %v64_v7  ;;  %v219_v10 = vpop.f32.mrb[1].mxu0 }
  0xe2   :  { %v220_v12 = vadd.f32 %v219_v10, %v59_v5 }
  0xe4   :  { %v1080_v14 = vpop.f32.mrb[2].mxu0  ;;  %v1181_v15 = vpack.c.bf16 %v225_v9, %v220_v12 }
  0xe5   :  { %v235_v16 = vadd.f32 %v1080_v14, %v74_v6  ;;  %v229_v17 = vpop.f32.mrb[3].mxu0 }
  0xe6   :  { %v230_v18 = vadd.f32 %v229_v17, %v69_v4  ;;  %1182 = vmatprep.subr.bf16.mxu1 %v1181_v15  ;;  %v335_v17 = vpop.permute.xlu0 %334 }
  0xe7   :  { %1184 = vmatpush3.bf16.msra.mxu1 %v1181_v15 }
  0xe8   :  { %v1185_v20 = vpack.c.bf16 %v235_v16, %v230_v18  ;;  %v1083_v21 = vpop.f32.mrb[4].mxu0 }
  0xe9   :  { %v245_v23 = vadd.f32 %v1083_v21, %v84_v11  ;;  %v239_v24 = vpop.f32.mrb[5].mxu0 }
  0xea   :  { %v240_v25 = vadd.f32 %v239_v24, %v79_v13  ;;  %1186 = vmatprep.subr.bf16.mxu1 %v1185_v20  ;;  %v340_v13 = vpop.permute.xlu1 %339 }
  0xeb   :  { %1188 = vmatpush3.bf16.msra.mxu1 %v1185_v20 }
  0xec   :  { %v1189_v26 = vpack.c.bf16 %v245_v23, %v240_v25  ;;  %v1086_v27 = vpop.f32.mrb[6].mxu0 }
  0xed   :  { %v255_v28 = vadd.f32 %v1086_v27, %v94_v19  ;;  %v249_v29 = vpop.f32.mrb[7].mxu0 }
  0xee   :  { %v250_v31 = vadd.f32 %v249_v29, %v89_v22  ;;  %1190 = vmatprep.subr.bf16.mxu1 %v1189_v26 }
  0xef   :  { %1192 = vmatpush3.bf16.msra.mxu1 %v1189_v26 }
  0xf0   :  { %v1193_v33 = vpack.c.bf16 %v255_v28, %v250_v31  ;;  %v1089_v34 = vpop.f32.mrb[8].mxu0 }
  0xf1   :  { %v265_v35 = vadd.f32 %v1089_v34, %v104_v30  ;;  %v259_v36 = vpop.f32.mrb[9].mxu0  ;;  %v350_v30 = vpop.permute.xlu1 %349 }
  0xf2   :  { %v260_v37 = vadd.f32 %v259_v36, %v99_v32  ;;  %1194 = vmatprep.subr.bf16.mxu1 %v1193_v33 }
  0xf3   :  { %1196 = vmatpush3.bf16.msra.mxu1 %v1193_v33  ;;  %v345_v33 = vpop.permute.xlu0 %344 }
  0xf4   :  { %v1197_v39 = vpack.c.bf16 %v265_v35, %v260_v37  ;;  %v1092_v40 = vpop.f32.mrb[10].mxu0 }
  0xf5   :  { %v275_v42 = vadd.f32 %v1092_v40, %v114_v38  ;;  %v269_v43 = vpop.f32.mrb[11].mxu0 }
  0xf6   :  { %v270_v44 = vadd.f32 %v269_v43, %v109_v41  ;;  %1198 = vmatprep.subr.bf16.mxu1 %v1197_v39 }
  0xf7   :  { %1200 = vmatpush3.bf16.msra.mxu1 %v1197_v39 }
  0xf8   :  { %v1201_v45 = vpack.c.bf16 %v275_v42, %v270_v44  ;;  %v360_v44 = vpop.permute.xlu1 %359 }
  0xfa   :  { %1202 = vmatprep.subr.bf16.mxu1 %v1201_v45 }
  0xfb   :  { %1204 = vmatpush3.bf16.msra.mxu1 %v1201_v45 }
  0xfe   :  { %1118 = vmatmul.mubr.msk.f32.vlgmr.msra.gmra.mrb[0].mxu1 %vm362_vm1, %v279_v46 }
  0xff   :  { %1120 = vmatprep.mubr.msk.f32.mxu1 %vm362_vm1, %v280_v47 }
 0x102   :  { %1121 = vmatmul.mubr.msk.f32.gmra.mrb[2].mxu1 %vm362_vm1, %v281_v48  ;;  %v355_v48 = vpop.permute.xlu0 %354 }
 0x103   :  { %1123 = vmatprep.mubr.msk.f32.mxu1 %vm362_vm1, %v282_v49 }
 0x106   :  { %1124 = vmatmul.mubr.msk.f32.gmra.mrb[4].mxu1 %vm362_vm1, %v283_v50 }
 0x107   :  { %1126 = vmatprep.mubr.msk.f32.mxu1 %vm362_vm1, %v284_v51 }
 0x10a   :  { %1127 = vmatmul.mubr.msk.f32.gmra.mrb[6].mxu1 %vm362_vm1, %v285_v52 }
 0x10b   :  { %1129 = vmatprep.mubr.msk.f32.mxu1 %vm362_vm1, %v286_v53 }
 0x10e   :  { %1130 = vmatmul.mubr.msk.f32.gmra.mrb[8].mxu1 %vm362_vm1, %v287_v54 }
 0x10f   :  { %1132 = vmatprep.mubr.msk.f32.mxu1 %vm362_vm1, %v288_v55 }
 0x112   :  { %1133 = vmatmul.mubr.msk.f32.gmra.mrb[10].mxu1 %vm362_vm1, %v289_v56 }
 0x1d1   :  { %v1119_v62 = vpop.f32.mrb[0].mxu1 }
 0x1d2   :  { %v471_v63 = vadd.f32 %v1119_v62, %v310_v58  ;;  %v465_v0 = vpop.f32.mrb[1].mxu1  ;;  %v973_v62 = vld [vmem:[%s1614_s3 + $0x78] sm:$0xff] }
 0x1d3   :  { %v466_v2 = vadd.f32 %v465_v0, %v305_v59  ;;  %v975_v0 = vld [vmem:[%s1614_s3 + $0x88] sm:$0xff] }
 0x1d4   :  { %v525_v4 = vmul.f32 0.01, %v471_v63 }
 0x1d5   :  { %v524_v5 = vmul.f32 0.01, %v466_v2  ;;  %v1122_v6 = vpop.f32.mrb[2].mxu1 }
 0x1d6   :  { %v537_v7 = vmax.f32 %v471_v63, %v525_v4  ;;  %v481_v8 = vadd.f32 %v1122_v6, %v320_v60  ;;  %v475_v9 = vpop.f32.mrb[3].mxu1  ;;  %v971_v60 = vld [vmem:[%s1614_s3 + $0x68] sm:$0xff]  ;;  %v974_v63 = vld [vmem:[%s1614_s3 + $0x80] sm:$0xff]  ;;  %v981_v6 = vld [vmem:[%s1614_s3 + $0xb8] sm:$0xff] }
 0x1d7   :  { %v536_v10 = vmax.f32 %v466_v2, %v524_v5  ;;  %v476_v11 = vadd.f32 %v475_v9, %v315_v61  ;;  %v972_v61 = vld [vmem:[%s1614_s3 + $0x70] sm:$0xff]  ;;  %v977_v2 = vld [vmem:[%s1614_s3 + $0x98] sm:$0xff]  ;;  %v979_v4 = vld [vmem:[%s1614_s3 + $0xa8] sm:$0xff] }
 0x1d8   :  { %v527_v12 = vmul.f32 0.01, %v481_v8  ;;  %v980_v5 = vld [vmem:[%s1614_s3 + $0xb0] sm:$0xff] }
 0x1d9   :  { %v526_v14 = vmul.f32 0.01, %v476_v11  ;;  %v1125_v15 = vpop.f32.mrb[4].mxu1  ;;  %v1205_v16 = vpack.c.bf16 %v537_v7, %v536_v10  ;;  %v577_v7 = vpop.permute.xlu0 %576 }
 0x1da   :  { %v539_v18 = vmax.f32 %v481_v8, %v527_v12  ;;  %v491_v19 = vadd.f32 %v1125_v15, %v330_v1  ;;  %v485_v20 = vpop.f32.mrb[5].mxu1  ;;  %v976_v1 = vld [vmem:[%s1614_s3 + $0x90] sm:$0xff]  ;;  %v582_v8 = vpop.permute.xlu1 %581 }
 0x1db   :  { %v538_v21 = vmax.f32 %v476_v11, %v526_v14  ;;  %v486_v22 = vadd.f32 %v485_v20, %v325_v3  ;;  %1206 = vmatprep.subr.bf16.mxu0 %v1205_v16  ;;  %v978_v3 = vld [vmem:[%s1614_s3 + $0xa0] sm:$0xff]  ;;  %s1258_s3 = smov [#allocation3]  }
 0x1dc   :  { %v529_v23 = vmul.f32 0.01, %v491_v19  ;;  %1208 = vmatpush3.bf16.msra.mxu0 %v1205_v16  ;;  %s938_s13 = sshll.u32 %s1258_s3, 4  ;;  %s939_s13 = int_to_ptr.vmem [resolvable:$true] %s938_s13 }
 0x1dd   :  { %v528_v24 = vmul.f32 0.01, %v486_v22  ;;  %v1128_v25 = vpop.f32.mrb[6].mxu1  ;;  %v1209_v26 = vpack.c.bf16 %v539_v18, %v538_v21  ;;  %v587_v9 = vpop.permute.xlu0 %586  ;;  %s1233_s14 = scalar_lea.vmem %s939_s13, 16  ;;  %s1237_s15 = scalar_lea.vmem %s939_s13, 32 }
 0x1de   :  { %v541_v27 = vmax.f32 %v491_v19, %v529_v23  ;;  %v501_v28 = vadd.f32 %v1128_v25, %v340_v13  ;;  %v495_v29 = vpop.f32.mrb[7].mxu1  ;;  %v592_v10 = vpop.permute.xlu1 %591  ;;  %p1234_p0 = scmp.ne.s32.totalorder %s939_s13, %s1233_s14  ;;  %p1238_p1 = scmp.lt.s32.totalorder %s939_s13, %s939_s13 }
 0x1df   :  { %v540_v31 = vmax.f32 %v486_v22, %v528_v24  ;;  %v496_v32 = vadd.f32 %v495_v29, %v335_v17  ;;  %1210 = vmatprep.subr.bf16.mxu0 %v1209_v26  ;;  %p1239_p2 = scmp.lt.s32.totalorder %s1237_s15, %s1233_s14 }
 0x1e0   :  { %v531_v34 = vmul.f32 0.01, %v501_v28  ;;  %1212 = vmatpush3.bf16.msra.mxu0 %v1209_v26 }
 0x1e1   :  { %v530_v35 = vmul.f32 0.01, %v496_v32  ;;  %v1131_v36 = vpop.f32.mrb[8].mxu1  ;;  %v1213_v37 = vpack.c.bf16 %v541_v27, %v540_v31  ;;  %v597_v11 = vpop.permute.xlu0 %596  ;;  %p1240_p3 = por %p1239_p2, %p1238_p1 }
 0x1e2   :  { %v543_v38 = vmax.f32 %v501_v28, %v531_v34  ;;  %v511_v39 = vadd.f32 %v1131_v36, %v350_v30  ;;  %v505_v40 = vpop.f32.mrb[9].mxu1  ;;  %v834_v12 = vpop.permute.xlu1 %833 }
 0x1e3   :  { %v542_v41 = vmax.f32 %v496_v32, %v530_v35  ;;  %v506_v42 = vadd.f32 %v505_v40, %v345_v33  ;;  %1214 = vmatprep.subr.bf16.mxu0 %v1213_v37  ;;  %p1241_p4 = pnand %p1240_p3, %p1234_p0 }
 0x1e4   :  { %v533_v43 = vmul.f32 0.01, %v511_v39  ;;  %1216 = vmatpush3.bf16.msra.mxu0 %v1213_v37 }
 0x1e5   :  { %v532_v45 = vmul.f32 0.01, %v506_v42  ;;  %v1134_v46 = vpop.f32.mrb[10].mxu1  ;;  %v1217_v47 = vpack.c.bf16 %v543_v38, %v542_v41  ;;  %v839_v13 = vpop.permute.xlu0 %838 }
 0x1e6   :  { %v545_v49 = vmax.f32 %v511_v39, %v533_v43  ;;  %v521_v50 = vadd.f32 %v1134_v46, %v360_v44  ;;  %v515_v51 = vpop.f32.mrb[11].mxu1  ;;  %v602_v14 = vpop.permute.xlu1 %601 }
 0x1e7   :  { %v544_v52 = vmax.f32 %v506_v42, %v532_v45  ;;  %v516_v53 = vadd.f32 %v515_v51, %v355_v48  ;;  %1218 = vmatprep.subr.bf16.mxu0 %v1217_v47 }
 0x1e8   :  { %v535_v54 = vmul.f32 0.01, %v521_v50  ;;  %1220 = vmatpush3.bf16.msra.mxu0 %v1217_v47 }
 0x1e9   :  { %v534_v55 = vmul.f32 0.01, %v516_v53  ;;  %v1221_v56 = vpack.c.bf16 %v545_v49, %v544_v52  ;;  %v844_v15 = vpop.permute.xlu0 %843 }
 0x1ea   :  { %v547_v57 = vmax.f32 %v521_v50, %v535_v54  ;;  %v607_v16 = vpop.permute.xlu1 %606 }
 0x1eb   :  { %v546_v58 = vmax.f32 %v516_v53, %v534_v55  ;;  %1222 = vmatprep.subr.bf16.mxu0 %v1221_v56 }
 0x1ec   :  { %1224 = vmatpush3.bf16.msra.mxu0 %v1221_v56 }
 0x1ed   :  { %v1225_v59 = vpack.c.bf16 %v547_v57, %v546_v58  ;;  %v849_v17 = vpop.permute.xlu0 %848 }
 0x1ee   :  { %v612_v18 = vpop.permute.xlu1 %611 }
 0x1ef   :  { %1226 = vmatprep.subr.bf16.mxu0 %v1225_v59 }
 0x1f0   :  { %1228 = vmatpush3.bf16.msra.mxu0 %v1225_v59 }
 0x1f1   :  { %v854_v19 = vpop.permute.xlu0 %853 }
 0x1f2   :  { %v617_v20 = vpop.permute.xlu1 %616 }
 0x1f3   :  { %1160 = vmatmul.mubr.msk.f32.vlgmr.msra.gmra.mrb[12].mxu0 %vm362_vm1, %v971_v60 }
 0x1f4   :  { %1162 = vmatprep.mubr.msk.f32.mxu0 %vm362_vm1, %v972_v61 }
 0x1f5   :  { %v859_v25 = vpop.permute.xlu0 %858 }
 0x1f6   :  { %v622_v29 = vpop.permute.xlu1 %621 }
 0x1f7   :  { %1163 = vmatmul.mubr.msk.f32.gmra.mrb[14].mxu0 %vm362_vm1, %v973_v62 }
 0x1f8   :  { %1165 = vmatprep.mubr.msk.f32.mxu0 %vm362_vm1, %v974_v63 }
 0x1f9   :  { %v864_v40 = vpop.permute.xlu0 %863 }
 0x1fa   :  { %v627_v47 = vpop.permute.xlu1 %626 }
 0x1fb   :  { %1166 = vmatmul.mubr.msk.f32.gmra.mrb[16].mxu0 %vm362_vm1, %v975_v0 }
 0x1fc   :  { %1168 = vmatprep.mubr.msk.f32.mxu0 %vm362_vm1, %v976_v1 }
 0x1fd   :  { %v869_v59 = vpop.permute.xlu0 %868 }
 0x1fe   :  { %v632_v1 = vpop.permute.xlu1 %631 }
 0x1ff   :  { %1169 = vmatmul.mubr.msk.f32.gmra.mrb[18].mxu0 %vm362_vm1, %v977_v2 }
 0x200   :  { %1171 = vmatprep.mubr.msk.f32.mxu0 %vm362_vm1, %v978_v3 }
 0x203   :  { %1172 = vmatmul.mubr.msk.f32.gmra.mrb[20].mxu0 %vm362_vm1, %v979_v4 }
 0x204   :  { %1174 = vmatprep.mubr.msk.f32.mxu0 %vm362_vm1, %v980_v5 }
 0x207   :  { %1175 = vmatmul.mubr.msk.f32.gmra.mrb[22].mxu0 %vm362_vm1, %v981_v6 }
 0x2c6   :  { %v1161_v21 = vpop.f32.mrb[12].mxu0 }
 0x2c7   :  { %v742_v22 = vadd.f32 %v1161_v21, %v582_v8  ;;  %v736_v23 = vpop.f32.mrb[13].mxu0 }
 0x2c8   :  { %v737_v24 = vadd.f32 %v736_v23, %v577_v7  ;;  %v879_v23 = vpop.permute.xlu1 %878 }
 0x2c9   :  { %v796_v26 = vmul.f32 0.01, %v742_v22 }
 0x2ca   :  { %v795_v27 = vmul.f32 0.01, %v737_v24  ;;  %v1164_v28 = vpop.f32.mrb[14].mxu0 }
 0x2cb   :  { %v808_v30 = vmax.f32 %v742_v22, %v796_v26  ;;  %v752_v31 = vadd.f32 %v1164_v28, %v592_v10  ;;  %v746_v32 = vpop.f32.mrb[15].mxu0 }
 0x2cc   :  { %v807_v33 = vmax.f32 %v737_v24, %v795_v27  ;;  %v747_v34 = vadd.f32 %v746_v32, %v587_v9 }
 0x2cd   :  { %v892_v35 = vmul.f32 %v839_v13, %v808_v30  ;;  %v798_v36 = vmul.f32 0.01, %v752_v31 }
 0x2ce   :  { %v891_v37 = vmul.f32 %v834_v12, %v807_v33  ;;  %v797_v38 = vmul.f32 0.01, %v747_v34  ;;  %v1167_v39 = vpop.f32.mrb[16].mxu0 }
 0x2cf   :  { %v810_v41 = vmax.f32 %v752_v31, %v798_v36  ;;  %v762_v42 = vadd.f32 %v1167_v39, %v602_v14  ;;  %v756_v43 = vpop.f32.mrb[17].mxu0  ;;  %v874_v14 = vpop.permute.xlu0 %873 }
 0x2d0   :  { %v903_v44 = vadd.f32 %v892_v35, %v891_v37  ;;  %v809_v45 = vmax.f32 %v747_v34, %v797_v38  ;;  %v757_v46 = vadd.f32 %v756_v43, %v597_v11  ;;  %v889_v34 = vpop.permute.xlu1 %888  ;;  %v926_v37 = vlaneseq }
 0x2d1   :  { %v800_v48 = vmul.f32 0.01, %v762_v42  ;;  %v894_v52 = vmul.f32 %v849_v17, %v810_v41 }
 0x2d2   :  { %v893_v49 = vmul.f32 %v844_v15, %v809_v45  ;;  %v799_v50 = vmul.f32 0.01, %v757_v46  ;;  %v1170_v51 = vpop.f32.mrb[18].mxu0 }
 0x2d3   :  { %v772_v53 = vadd.f32 %v1170_v51, %v612_v18  ;;  %v766_v54 = vpop.f32.mrb[19].mxu0  ;;  %v812_v56 = vmax.f32 %v762_v42, %v800_v48  ;;  %v884_v31 = vpop.permute.xlu0 %883 }
 0x2d4   :  { %v904_v55 = vadd.f32 %v903_v44, %v893_v49  ;;  %v811_v57 = vmax.f32 %v757_v46, %v799_v50  ;;  %v767_v58 = vadd.f32 %v766_v54, %v607_v16 }
 0x2d5   :  { %v802_v60 = vmul.f32 0.01, %v772_v53  ;;  %v896_v5 = vmul.f32 %v859_v25, %v812_v56 }
 0x2d6   :  { %v895_v61 = vmul.f32 %v854_v19, %v811_v57  ;;  %v905_v62 = vadd.f32 %v904_v55, %v894_v52  ;;  %v801_v63 = vmul.f32 0.01, %v767_v58  ;;  %v1173_v0 = vpop.f32.mrb[20].mxu0 }
 0x2d7   :  { %v814_v2 = vmax.f32 %v772_v53, %v802_v60  ;;  %v782_v3 = vadd.f32 %v1173_v0, %v622_v29  ;;  %v776_v4 = vpop.f32.mrb[21].mxu0  ;;  %v924_v45 = vpop.permute.xlu0 %923 }
 0x2d8   :  { %v906_v6 = vadd.f32 %v905_v62, %v895_v61  ;;  %v813_v7 = vmax.f32 %v767_v58, %v801_v63  ;;  %v777_v8 = vadd.f32 %v776_v4, %v617_v20 }
 0x2d9   :  { %v804_v9 = vmul.f32 0.01, %v782_v3  ;;  %v898_v15 = vmul.f32 %v869_v59, %v814_v2 }
 0x2da   :  { %v897_v10 = vmul.f32 %v864_v40, %v813_v7  ;;  %v907_v11 = vadd.f32 %v906_v6, %v896_v5  ;;  %v803_v12 = vmul.f32 0.01, %v777_v8  ;;  %v1176_v13 = vpop.f32.mrb[22].mxu0  ;;  %v927_v40 = vshrl.u32 %v926_v37, 7 }
 0x2db   :  { %v792_v16 = vadd.f32 %v1176_v13, %v632_v1  ;;  %v786_v17 = vpop.f32.mrb[23].mxu0  ;;  %v816_v19 = vmax.f32 %v782_v3, %v804_v9 }
 0x2dc   :  { %v908_v18 = vadd.f32 %v907_v11, %v897_v10  ;;  %v815_v21 = vmax.f32 %v777_v8, %v803_v12  ;;  %v787_v22 = vadd.f32 %v786_v17, %v627_v47  ;;  %v928_v43 = vsub.s32 0, %v927_v40 }
 0x2dd   :  { %v806_v24 = vmul.f32 0.01, %v792_v16  ;;  %v900_v28 = vmul.f32 %v879_v23, %v816_v19 }
 0x2de   :  { %v899_v26 = vmul.f32 %v874_v14, %v815_v21  ;;  %v909_v25 = vadd.f32 %v908_v18, %v898_v15  ;;  %v805_v27 = vmul.f32 0.01, %v787_v22  ;;  %v929_v47 = vrot.slane %v924_v45, %v928_v43 }
 0x2df   :  { %v818_v29 = vmax.f32 %v792_v16, %v806_v24 }
 0x2e0   :  { %v910_v20 = vadd.f32 %v909_v25, %v899_v26  ;;  %v817_v30 = vmax.f32 %v787_v22, %v805_v27 }
 0x2e1   :  { %v902_v35 = vmul.f32 %v889_v34, %v818_v29 }
 0x2e2   :  { %v901_v32 = vmul.f32 %v884_v31, %v817_v30  ;;  %v911_v33 = vadd.f32 %v910_v20, %v900_v28 }
 0x2e4   :  { %v912_v36 = vadd.f32 %v911_v33, %v901_v32 }
 0x2e6   :  { %v913_v38 = vadd.f32 %v912_v36, %v902_v35 }
 0x2e8   :  { %v914_v39 = vrot.slane %v913_v38, 4 }
 0x2ea   :  { %v915_v41 = vadd.f32 %v914_v39, %v913_v38 }
 0x2ec   :  { %v916_v42 = vrot.slane %v915_v41, 2 }
 0x2ee   :  { %v917_v44 = vadd.f32 %v916_v42, %v915_v41 }
 0x2f0   :  { %v918_v46 = vrot.slane %v917_v44, 1 }
 0x2f2   :  { %v919_v48 = vadd.f32 %v918_v46, %v917_v44 }
 0x2f4   :  { %v930_v49 = vadd.f32 %v929_v47, %v919_v48 }
 0x2f6   :  { %931 = vst [vmem:[#allocation3] sm:$0x1] %v930_v49 }
 0x2f7   :  { %1244 = shalt.err (!%p1241_p4)
}
 0x2f8   :  { %s1245_s17 = scalar_lea.hbm %s1618_s7, 16 }
 0x2f9   :  { %p1246_p5 = scmp.ne.s32.totalorder %s1618_s7, %s1245_s17  ;;  %p1249_p6 = scmp.lt.u32.totalorder %s1245_s17, %s1618_s7 }
 0x2fb   :  { %p1251_p7 = pnand %p1249_p6, %p1246_p5 }
 0x2fd   :  { %1254 = shalt.err (!%p1251_p7)
}
 0x2fe   :  { %941 = dma.vmem_to_hbm [thread:$0]  %s939_s13, 16, %s1618_s7, [#allocation4]  }
 0x2ff   :  { %1255 = dma.done.wait [#allocation4], 16  }
 0x300   :  { %1256 = vsyncadd [#allocation4], 4294967280 }
 0x301   :  { %945 = vsyncpa [#allocation4], 1 }

</bundles_post_ra>
